<compile_context>
chip_gen: v5e
topology: v5e:2x2
jax: 0.10.0
libtpu: 0.0.40
codegen_flags: <defaults>
</compile_context>

<pallas_src>
import jax
import jax.numpy as jnp
from jax import lax
from jax.experimental import pallas as pl
from jax.experimental.pallas import tpu as pltpu


def _self_attention_kernel(x_ref, w_ref, bv_ref, gamma_ref, o_ref):
    # x block: (B, C, N) channel-major, whole batch in one shot.
    B, C, N = x_ref.shape
    gamma = gamma_ref[0]                      # scalar read from SMEM
    w = w_ref[...]                            # (2C+1, C) fused [A ; Wv ; kb]
    bv = bv_ref[...]                          # (C, 1)

    # B is tiny and static -> unrolled; every matmul stays a clean 2-D MXU op
    # on channel-major tiles (no batched-dot relayouts, no transposes).
    for b in range(B):
        xb = x_ref[b]                                            # (C, N)

        # One fused projection push: rows [0,C)=A@x, [C,2C)=Wv@x, [2C]=kb@x.
        z = jnp.dot(w, xb, preferred_element_type=jnp.float32)   # (2C+1, N)
        y = z[:C]                                                # (C, N)
        v = z[C:2 * C] + bv                                      # (C, N)
        r = z[2 * C:]                                            # (1, N)

        # energy[i, j] = x_i^T (Wq^T Wk) x_j + bq^T Wk x_j
        # (row-constant bias terms cancel under the row-wise softmax).
        energy = lax.dot_general(
            xb, y, (((0,), (0,)), ((), ())),
            preferred_element_type=jnp.float32) + r              # (N, N)

        # Numerically-stable softmax over keys (exact EUP reciprocal).
        m = jnp.max(energy, axis=-1, keepdims=True)
        p = jnp.exp(energy - m)
        attn = p * pl.reciprocal(jnp.sum(p, axis=-1, keepdims=True))

        # out[c, i] = sum_j v[c, j] * attn[i, j]   (NT matmul, no attn^T tile)
        out = lax.dot_general(
            v, attn, (((1,), (1,)), ((), ())),
            preferred_element_type=jnp.float32)                  # (C, N)

        # Residual + gamma, stored channel-major directly.
        o_ref[b] = (gamma * out + xb).astype(o_ref.dtype)


@jax.jit
def self_attention_pallas(x_nchw, wq, wk, wv, bq, bk, bv, gamma):
    """SAGAN self-attention forward.

    x_nchw : (B, C, W, H) float32
    wq, wk : (C//8, C)  1x1-conv weights in PyTorch (out_ch, in_ch) layout
    wv     : (C, C)
    bq, bk : (C//8,) ; bv : (C,) ; gamma : (1,)
    """
    B, C, W, H = x_nchw.shape
    N = W * H

    # NCHW -> (B, C, N): trailing-dim merge, free (no data movement).
    x_cn = x_nchw.reshape(B, C, N)

    # Weight prep (tiny, fused by XLA under jit):
    #   A  = Wq^T Wk   -> densifies the energy contraction to depth C
    #   kb = Wk^T bq   -> the only q/k bias term that survives the softmax
    # Fused weight rows: [A (C) ; Wv (C) ; kb (1)]  -> sublane-aligned slices.
    a_mat = wq.T @ wk                                            # (C, C)
    kb_row = (wk.T @ bq).reshape(1, C)                           # (1, C)
    w_fused = jnp.concatenate([a_mat, wv, kb_row], axis=0)       # (2C+1, C)
    bv_col = bv.reshape(C, 1)                                    # (C, 1)
    gamma1 = gamma.reshape(1).astype(jnp.float32)                # (1,) -> SMEM

    F = 2 * C + 1

    out_cn = pl.pallas_call(
        _self_attention_kernel,
        out_shape=jax.ShapeDtypeStruct((B, C, N), x_nchw.dtype),
        grid_spec=pltpu.PrefetchScalarGridSpec(
            num_scalar_prefetch=0,
            grid=(1,),                                  # single step, whole batch
            in_specs=[
                pl.BlockSpec((B, C, N), lambda i: (0, 0, 0)),      # x (channel-major)
                pl.BlockSpec((F, C), lambda i: (0, 0)),            # fused [A;Wv;kb]
                pl.BlockSpec((C, 1), lambda i: (0, 0)),            # bv column
                pl.BlockSpec(memory_space=pltpu.MemorySpace.SMEM), # gamma scalar
            ],
            out_specs=pl.BlockSpec((B, C, N), lambda i: (0, 0, 0)),
        ),
        compiler_params=pltpu.CompilerParams(
            dimension_semantics=("arbitrary",)),
    )(x_cn, w_fused, bv_col, gamma1)

    # (B, C, N) -> (B, C, W, H): trailing-dim split, free.
    return out_cn.reshape(B, C, W, H)


def self_attention_ref(x_nchw, wq, wk, wv, bq, bk, bv, gamma):
    """Pure-JAX reference mirroring the PyTorch forward exactly."""
    B, C, W, H = x_nchw.shape
    N = W * H
    x_cn = x_nchw.reshape(B, C, N)
    q = jnp.einsum('oc,bcn->bon', wq, x_cn) + bq[None, :, None]   # (B, C8, N)
    k = jnp.einsum('oc,bcn->bon', wk, x_cn) + bk[None, :, None]   # (B, C8, N)
    v = jnp.einsum('oc,bcn->bon', wv, x_cn) + bv[None, :, None]   # (B, C,  N)
    energy = jnp.einsum('boi,boj->bij', q, k)                     # bmm(q^T, k)
    attn = jax.nn.softmax(energy, axis=-1)
    out = jnp.einsum('bcj,bij->bci', v, attn)                     # bmm(v, attn^T)
    y = gamma * out + x_cn
    return y.reshape(B, C, W, H)


if __name__ == "__main__":
    key = jax.random.PRNGKey(0)
    B, C, W, H = 2, 32, 8, 8          # in_dim=32 so in_dim//8 = 4
    C8 = C // 8

    ks = jax.random.split(key, 8)
    x = jax.random.normal(ks[0], (B, C, W, H), dtype=jnp.float32)
    # 1x1 conv weights in PyTorch (out_channels, in_channels) layout.
    wq = jax.random.normal(ks[1], (C8, C), dtype=jnp.float32) * 0.1
    wk = jax.random.normal(ks[2], (C8, C), dtype=jnp.float32) * 0.1
    wv = jax.random.normal(ks[3], (C, C), dtype=jnp.float32) * 0.1
    bq = jax.random.normal(ks[4], (C8,), dtype=jnp.float32) * 0.1
    bk = jax.random.normal(ks[5], (C8,), dtype=jnp.float32) * 0.1
    bv = jax.random.normal(ks[6], (C,), dtype=jnp.float32) * 0.1
    # PyTorch inits gamma to 0 (which would make out == x); use a nonzero
    # deterministic value so the attention path is actually exercised.
    gamma = jnp.array([0.5], dtype=jnp.float32)

    y = self_attention_pallas(x, wq, wk, wv, bq, bk, bv, gamma)
    jax.block_until_ready(y)

    y_ref = self_attention_ref(x, wq, wk, wv, bq, bk, bv, gamma)
    assert y.shape == (B, C, W, H)
    # The Wq^T.Wk algebraic fold changes rounding slightly vs the reference.
    assert jnp.allclose(y, y_ref, atol=1e-3, rtol=1e-3), "mismatch vs reference"

    print("KERNEL_OK")
</pallas_src>

<mosaic_0001>
module attributes {stable_mosaic.version = 11 : i64} {
  func.func @_self_attention_kernel(%arg0: i32, %arg1: memref<2x32x64xf32, #tpu.memory_space<vmem>>, %arg2: memref<65x32xf32, #tpu.memory_space<vmem>>, %arg3: memref<32x1xf32, #tpu.memory_space<vmem>>, %arg4: memref<1xf32, #tpu.memory_space<smem>>, %arg5: memref<2x32x64xf32, #tpu.memory_space<vmem>>) attributes {dimension_semantics = [#tpu.dimension_semantics<arbitrary>], iteration_bounds = array<i64: 1>, scalar_prefetch = 0 : i64, scratch_operands = 0 : i64, tpu.core_type = #tpu.core_type<tc>, window_params = [{pipeline_mode = #tpu.pipeline_mode<synchronous>, transform_indices = @transform_0, window_bounds = array<i64: 2, 32, 64>}, {pipeline_mode = #tpu.pipeline_mode<synchronous>, transform_indices = @transform_1, window_bounds = array<i64: 65, 32>}, {pipeline_mode = #tpu.pipeline_mode<synchronous>, transform_indices = @transform_2, window_bounds = array<i64: 32, 1>}, {transform_indices = @transform_3, window_bounds = array<i64: 1>}, {pipeline_mode = #tpu.pipeline_mode<synchronous>, transform_indices = @transform_4, window_bounds = array<i64: 2, 32, 64>}]} {
    %c0 = arith.constant 0 : index
    %0 = memref.load %arg4[%c0] : memref<1xf32, #tpu.memory_space<smem>>
    %c0_0 = arith.constant 0 : index
    %c0_1 = arith.constant 0 : index
    %1 = vector.load %arg2[%c0_0, %c0_1] : memref<65x32xf32, #tpu.memory_space<vmem>>, vector<65x32xf32>
    %c0_2 = arith.constant 0 : index
    %c0_3 = arith.constant 0 : index
    %2 = vector.load %arg3[%c0_2, %c0_3] : memref<32x1xf32, #tpu.memory_space<vmem>>, vector<32x1xf32>
    %c0_4 = arith.constant 0 : index
    %c0_5 = arith.constant 0 : index
    %c0_6 = arith.constant 0 : index
    %3 = vector.load %arg1[%c0_4, %c0_5, %c0_6] : memref<2x32x64xf32, #tpu.memory_space<vmem>>, vector<1x32x64xf32>
    %4 = vector.shape_cast %3 : vector<1x32x64xf32> to vector<32x64xf32>
    %cst = arith.constant dense<0.000000e+00> : vector<65x64xf32>
    %5 = tpu.matmul %1, %4, %cst {dimension_numbers = #tpu.dot_dimension_numbers<[1], [0], [0], [1], [0, 0, 1, 1], [], []>} : vector<65x32xf32>, vector<32x64xf32>, vector<65x64xf32> -> vector<65x64xf32>
    %6 = vector.extract_strided_slice %5 {offsets = [0, 0], sizes = [32, 64], strides = [1, 1]} : vector<65x64xf32> to vector<32x64xf32>
    %7 = vector.extract_strided_slice %5 {offsets = [32, 0], sizes = [32, 64], strides = [1, 1]} : vector<65x64xf32> to vector<32x64xf32>
    %8 = vector.broadcast %2 : vector<32x1xf32> to vector<32x64xf32>
    %9 = arith.addf %7, %8 : vector<32x64xf32>
    %10 = vector.extract_strided_slice %5 {offsets = [64, 0], sizes = [1, 64], strides = [1, 1]} : vector<65x64xf32> to vector<1x64xf32>
    %cst_7 = arith.constant dense<0.000000e+00> : vector<64x64xf32>
    %11 = tpu.matmul %4, %6, %cst_7 {dimension_numbers = #tpu.dot_dimension_numbers<[0], [0], [1], [1], [0, 1, 1, 1], [], []>} : vector<32x64xf32>, vector<32x64xf32>, vector<64x64xf32> -> vector<64x64xf32>
    %12 = vector.broadcast %10 : vector<1x64xf32> to vector<64x64xf32>
    %13 = arith.addf %11, %12 : vector<64x64xf32>
    %cst_8 = arith.constant dense<0xFF800000> : vector<64xf32>
    %14 = vector.multi_reduction <maximumf>, %13, %cst_8 [1] : vector<64x64xf32> to vector<64xf32>
    %15 = vector.shape_cast %14 : vector<64xf32> to vector<64x1xf32>
    %16 = vector.broadcast %15 : vector<64x1xf32> to vector<64x64xf32>
    %17 = arith.subf %13, %16 : vector<64x64xf32>
    %18 = math.exp %17 : vector<64x64xf32>
    %cst_9 = arith.constant dense<0.000000e+00> : vector<64xf32>
    %19 = vector.multi_reduction <add>, %18, %cst_9 [1] : vector<64x64xf32> to vector<64xf32>
    %20 = vector.shape_cast %19 : vector<64xf32> to vector<64x1xf32>
    %21 = tpu.reciprocal %20 : vector<64x1xf32> -> vector<64x1xf32>
    %22 = vector.broadcast %21 : vector<64x1xf32> to vector<64x64xf32>
    %23 = arith.mulf %18, %22 : vector<64x64xf32>
    %cst_10 = arith.constant dense<0.000000e+00> : vector<32x64xf32>
    %24 = tpu.matmul %9, %23, %cst_10 {dimension_numbers = #tpu.dot_dimension_numbers<[1], [1], [0], [0], [0, 0, 1, 0], [], []>} : vector<32x64xf32>, vector<64x64xf32>, vector<32x64xf32> -> vector<32x64xf32>
    %25 = vector.broadcast %0 : f32 to vector<32x64xf32>
    %26 = arith.mulf %25, %24 : vector<32x64xf32>
    %27 = arith.addf %26, %4 : vector<32x64xf32>
    %c0_11 = arith.constant 0 : index
    %c0_12 = arith.constant 0 : index
    %c0_13 = arith.constant 0 : index
    %28 = vector.load %arg5[%c0_11, %c0_12, %c0_13] : memref<2x32x64xf32, #tpu.memory_space<vmem>>, vector<1x32x64xf32>
    %29 = vector.shape_cast %28 : vector<1x32x64xf32> to vector<32x64xf32>
    %30 = vector.shape_cast %27 : vector<32x64xf32> to vector<1x32x64xf32>
    tpu.vector_store %arg5[%c0_11, %c0_12, %c0_13], %30 {strides = array<i32>} : memref<2x32x64xf32, #tpu.memory_space<vmem>>, vector<1x32x64xf32>,
    %c1 = arith.constant 1 : index
    %c0_14 = arith.constant 0 : index
    %c0_15 = arith.constant 0 : index
    %31 = vector.load %arg1[%c1, %c0_14, %c0_15] : memref<2x32x64xf32, #tpu.memory_space<vmem>>, vector<1x32x64xf32>
    %32 = vector.shape_cast %31 : vector<1x32x64xf32> to vector<32x64xf32>
    %cst_16 = arith.constant dense<0.000000e+00> : vector<65x64xf32>
    %33 = tpu.matmul %1, %32, %cst_16 {dimension_numbers = #tpu.dot_dimension_numbers<[1], [0], [0], [1], [0, 0, 1, 1], [], []>} : vector<65x32xf32>, vector<32x64xf32>, vector<65x64xf32> -> vector<65x64xf32>
    %34 = vector.extract_strided_slice %33 {offsets = [0, 0], sizes = [32, 64], strides = [1, 1]} : vector<65x64xf32> to vector<32x64xf32>
    %35 = vector.extract_strided_slice %33 {offsets = [32, 0], sizes = [32, 64], strides = [1, 1]} : vector<65x64xf32> to vector<32x64xf32>
    %36 = vector.broadcast %2 : vector<32x1xf32> to vector<32x64xf32>
    %37 = arith.addf %35, %36 : vector<32x64xf32>
    %38 = vector.extract_strided_slice %33 {offsets = [64, 0], sizes = [1, 64], strides = [1, 1]} : vector<65x64xf32> to vector<1x64xf32>
    %cst_17 = arith.constant dense<0.000000e+00> : vector<64x64xf32>
    %39 = tpu.matmul %32, %34, %cst_17 {dimension_numbers = #tpu.dot_dimension_numbers<[0], [0], [1], [1], [0, 1, 1, 1], [], []>} : vector<32x64xf32>, vector<32x64xf32>, vector<64x64xf32> -> vector<64x64xf32>
    %40 = vector.broadcast %38 : vector<1x64xf32> to vector<64x64xf32>
    %41 = arith.addf %39, %40 : vector<64x64xf32>
    %cst_18 = arith.constant dense<0xFF800000> : vector<64xf32>
    %42 = vector.multi_reduction <maximumf>, %41, %cst_18 [1] : vector<64x64xf32> to vector<64xf32>
    %43 = vector.shape_cast %42 : vector<64xf32> to vector<64x1xf32>
    %44 = vector.broadcast %43 : vector<64x1xf32> to vector<64x64xf32>
    %45 = arith.subf %41, %44 : vector<64x64xf32>
    %46 = math.exp %45 : vector<64x64xf32>
    %cst_19 = arith.constant dense<0.000000e+00> : vector<64xf32>
    %47 = vector.multi_reduction <add>, %46, %cst_19 [1] : vector<64x64xf32> to vector<64xf32>
    %48 = vector.shape_cast %47 : vector<64xf32> to vector<64x1xf32>
    %49 = tpu.reciprocal %48 : vector<64x1xf32> -> vector<64x1xf32>
    %50 = vector.broadcast %49 : vector<64x1xf32> to vector<64x64xf32>
    %51 = arith.mulf %46, %50 : vector<64x64xf32>
    %cst_20 = arith.constant dense<0.000000e+00> : vector<32x64xf32>
    %52 = tpu.matmul %37, %51, %cst_20 {dimension_numbers = #tpu.dot_dimension_numbers<[1], [1], [0], [0], [0, 0, 1, 0], [], []>} : vector<32x64xf32>, vector<64x64xf32>, vector<32x64xf32> -> vector<32x64xf32>
    %53 = vector.broadcast %0 : f32 to vector<32x64xf32>
    %54 = arith.mulf %53, %52 : vector<32x64xf32>
    %55 = arith.addf %54, %32 : vector<32x64xf32>
    %c1_21 = arith.constant 1 : index
    %c0_22 = arith.constant 0 : index
    %c0_23 = arith.constant 0 : index
    %56 = vector.load %arg5[%c1_21, %c0_22, %c0_23] : memref<2x32x64xf32, #tpu.memory_space<vmem>>, vector<1x32x64xf32>
    %57 = vector.shape_cast %56 : vector<1x32x64xf32> to vector<32x64xf32>
    %58 = vector.shape_cast %55 : vector<32x64xf32> to vector<1x32x64xf32>
    tpu.vector_store %arg5[%c1_21, %c0_22, %c0_23], %58 {strides = array<i32>} : memref<2x32x64xf32, #tpu.memory_space<vmem>>, vector<1x32x64xf32>,
    return
  }
  func.func @transform_0(%arg0: i32) -> (i32, i32, i32) {
    %c0_i32 = arith.constant 0 : i32
    %c0_i32_0 = arith.constant 0 : i32
    %c0_i32_1 = arith.constant 0 : i32
    %c0_i32_2 = arith.constant 0 : i32
    return %c0_i32, %c0_i32_0, %c0_i32_1 : i32, i32, i32
  }
  func.func @transform_1(%arg0: i32) -> (i32, i32) {
    %c0_i32 = arith.constant 0 : i32
    %c0_i32_0 = arith.constant 0 : i32
    %c0_i32_1 = arith.constant 0 : i32
    return %c0_i32, %c0_i32_0 : i32, i32
  }
  func.func @transform_2(%arg0: i32) -> (i32, i32) {
    %c0_i32 = arith.constant 0 : i32
    %c0_i32_0 = arith.constant 0 : i32
    %c0_i32_1 = arith.constant 0 : i32
    return %c0_i32, %c0_i32_0 : i32, i32
  }
  func.func @transform_3(%arg0: i32) -> i32 {
    %c0_i32 = arith.constant 0 : i32
    %c0_i32_0 = arith.constant 0 : i32
    return %c0_i32 : i32
  }
  func.func @transform_4(%arg0: i32) -> (i32, i32, i32) {
    %c0_i32 = arith.constant 0 : i32
    %c0_i32_0 = arith.constant 0 : i32
    %c0_i32_1 = arith.constant 0 : i32
    %c0_i32_2 = arith.constant 0 : i32
    return %c0_i32, %c0_i32_0, %c0_i32_1 : i32, i32, i32
  }
}

</mosaic_0001>

<bundles_post_ra>
// kernel: self_attention_pallas.1
= control target key start
LH: loop header
LB: loop body
LE: loop exit
PB: predicated region body
PF: predicated region fallthrough
CT: control target
= control target key end

     0   :  { %vm36_vm0 = vcmask 261120   ;;  %vm230_vm1 = vcmask 523264   ;;  %s1687_s0 = inlined_call_operand.vmem [shape: f32[2,32,64], index: 0, kind: input, shape index: {}]   ;;  %s1688_s1 = inlined_call_operand.vmem [shape: f32[65,32], index: 1, kind: input, shape index: {}]   ;;  %s1689_s2 = inlined_call_operand.vmem [shape: f32[32,1], index: 2, kind: input, shape index: {}]   ;;  %s1690_s3 = inlined_call_operand.<no memory space> [shape: f32[1], index: 3, kind: input, shape index: {}]   ;;  %s1691_s4 = inlined_call_operand.vmem [shape: f32[2,32,64], index: 4, kind: output, shape index: {}]  }
   0x1   :  { %v1104_v0 = vld [vmem:[%s1687_s0 + $0x18] sm:$0xff]  ;;  %v32_v1 = vld [vmem:[%s1687_s0] sm:$0xff]  ;;  %v34_v2 = vld [vmem:[%s1687_s0 + $0x10] sm:$0xff] }
   0x2   :  { %76 = vmatpush.msra.mxu0 %v1104_v0  ;;  %133 = vxpose.xlu0.b32.start [1/4] (short) (narrow) %v32_v1, 64  ;;  %v33_v3 = vld [vmem:[%s1687_s0 + $0x8] sm:$0xff]  ;;  %v1119_v4 = vld [vmem:[%s1688_s1] sm:$0xff]  ;;  %v1133_v6 = vld [vmem:[%s1688_s1 + $0x10] sm:$0xff] }
   0x3   :  { %v1126_v5 = vld [vmem:[%s1688_s1 + $0x8] sm:$0xff]  ;;  %v1141_v7 = vld [vmem:[%s1688_s1 + $0x18] sm:$0xff]  ;;  %v1148_v8 = vld [vmem:[%s1688_s1 + $0x20] sm:$0xff] }
   0x4   :  { %77 = vmatpush.msra.mxu0 %v34_v2  ;;  %v1155_v9 = vld [vmem:[%s1688_s1 + $0x28] sm:$0xff]  ;;  %v1162_v10 = vld [vmem:[%s1688_s1 + $0x30] sm:$0xff]  ;;  %v1169_v11 = vld [vmem:[%s1688_s1 + $0x38] sm:$0xff] }
   0x5   :  { %v1176_v12 = vld [vmem:[%s1688_s1 + $0x40] sm:$0x1] }
   0x6   :  { %78 = vmatpush.msra.mxu0 %v33_v3 }
   0x8   :  { %79 = vmatpush.msra.mxu0 %v32_v1 }
   0x9   :  { %926 = vmatmul.msk.f32.vlgmr.msra.gmra.mxu0 %vm36_vm0, %v1119_v4 }
   0xa   :  { %134 = vxpose.xlu0.b32.cont [2/4] (short) (narrow) %v33_v3, 64 }
  0x11   :  { %927 = vmatmul.msk.f32.gmra.mxu0 %vm36_vm0, %v1126_v5 }
  0x12   :  { %135 = vxpose.xlu0.b32.cont [3/4] (short) (narrow) %v34_v2, 64 }
  0x19   :  { %928 = vmatmul.msk.f32.gmra.mxu0 %vm36_vm0, %v1133_v6 }
  0x1a   :  { %136 = vxpose.xlu0.b32.end [4/4] (short) (narrow) %v1104_v0, 64 }
  0x21   :  { %929 = vmatmul.msk.f32.gmra.mxu0 %vm36_vm0, %v1141_v7 }
  0x29   :  { %930 = vmatmul.msk.f32.gmra.mxu0 %vm36_vm0, %v1148_v8 }
  0x31   :  { %931 = vmatmul.msk.f32.gmra.mxu0 %vm36_vm0, %v1155_v9 }
  0x39   :  { %932 = vmatmul.msk.f32.gmra.mxu0 %vm36_vm0, %v1162_v10 }
  0x41   :  { %933 = vmatmul.msk.f32.gmra.mxu0 %vm36_vm0, %v1169_v11 }
  0x49   :  { %934 = vmatmul.msk.f32.gmra.mxu0 %vm36_vm0, %v1176_v12 }
  0x86   :  { %v81_v13 = vpop.f32.mrf.mxu0 }
  0x8e   :  { %v84_v14 = vpop.f32.mrf.mxu0 }
  0x96   :  { %v87_v15 = vpop.f32.mrf.mxu0 }
  0x9e   :  { %v90_v16 = vpop.f32.mrf.mxu0 }
  0x9f   :  { %201 = vmatpush.msra.mxu1 %v90_v16  ;;  %v1218_v16 = vld [vmem:[%s1687_s0 + $0x38] sm:$0xff] }
  0xa0   :  { %518 = vmatpush.msra.mxu3 %v1218_v16 }
  0xa1   :  { %202 = vmatpush.msra.mxu1 %v87_v15 }
  0xa3   :  { %203 = vmatpush.msra.mxu1 %v84_v14 }
  0xa5   :  { %204 = vmatpush.msra.mxu1 %v81_v13 }
  0xa6   :  { %v149_v17 = vpop.trf.xlu0  ;;  %v1188_v25 = vpop.f32.mrf.mxu0 }
  0xa7   :  { %935 = vmatmul.msk.f32.vlgmr.msra.gmra.mxu1 %vm36_vm0, %v149_v17  ;;  %v957_v17 = vld [vmem:[%s1687_s0 + $0x30] sm:$0xff] }
  0xa8   :  { %519 = vmatpush.msra.mxu3 %v957_v17 }
  0xae   :  { %v150_v18 = vpop.trf.xlu0  ;;  %v1190_v27 = vpop.f32.mrf.mxu0 }
  0xaf   :  { %936 = vmatmul.msk.f32.gmra.mxu1 %vm36_vm0, %v150_v18 }
  0xb6   :  { %v151_v19 = vpop.trf.xlu0  ;;  %v1192_v29 = vpop.f32.mrf.mxu0 }
  0xb7   :  { %937 = vmatmul.msk.f32.gmra.mxu1 %vm36_vm0, %v151_v19  ;;  %v1075_v19 = vmov 0  }
  0xb8   :  { %1002 = vset.pattern.permute.xlu2 %v1075_v19  ;;  %1003 = vset.pattern.permute.xlu0 %v1075_v19 }
  0xbe   :  { %v152_v20 = vpop.trf.xlu0  ;;  %v1194_v32 = vpop.f32.mrf.mxu0 }
  0xbf   :  { %938 = vmatmul.msk.f32.gmra.mxu1 %vm36_vm0, %v152_v20 }
  0xc6   :  { %v153_v21 = vpop.trf.xlu0  ;;  %v105_v34 = vpop.f32.mrf.mxu0 }
  0xc7   :  { %939 = vmatmul.msk.f32.gmra.mxu1 %vm36_vm0, %v153_v21  ;;  %v132_v35 = vperm.slane %v105_v34, 0  ;;  %v956_v21 = vld [vmem:[%s1687_s0 + $0x28] sm:$0xff] }
  0xc8   :  { %520 = vmatpush.msra.mxu3 %v956_v21 }
  0xce   :  { %v154_v22 = vpop.trf.xlu0 }
  0xcf   :  { %940 = vmatmul.msk.f32.gmra.mxu1 %vm36_vm0, %v154_v22 }
  0xd6   :  { %v155_v23 = vpop.trf.xlu0 }
  0xd7   :  { %941 = vmatmul.msk.f32.gmra.mxu1 %vm36_vm0, %v155_v23 }
  0xde   :  { %v156_v24 = vpop.trf.xlu0 }
  0xdf   :  { %942 = vmatmul.msk.f32.gmra.mxu1 %vm36_vm0, %v156_v24  ;;  %v955_v24 = vld [vmem:[%s1687_s0 + $0x20] sm:$0xff] }
  0xe0   :  { %521 = vmatpush.msra.mxu3 %v955_v24 }
  0xe1   :  { %959 = vmatmul.msk.f32.vlgmr.msra.gmra.mxu3 %vm36_vm0, %v1119_v4 }
  0xe9   :  { %960 = vmatmul.msk.f32.gmra.mxu3 %vm36_vm0, %v1126_v5 }
  0xf1   :  { %961 = vmatmul.msk.f32.gmra.mxu3 %vm36_vm0, %v1133_v6 }
  0xf9   :  { %962 = vmatmul.msk.f32.gmra.mxu3 %vm36_vm0, %v1141_v7 }
 0x101   :  { %963 = vmatmul.msk.f32.gmra.mxu3 %vm36_vm0, %v1148_v8 }
 0x109   :  { %964 = vmatmul.msk.f32.gmra.mxu3 %vm36_vm0, %v1155_v9 }
 0x111   :  { %965 = vmatmul.msk.f32.gmra.mxu3 %vm36_vm0, %v1162_v10 }
 0x119   :  { %966 = vmatmul.msk.f32.gmra.mxu3 %vm36_vm0, %v1169_v11 }
 0x121   :  { %967 = vmatmul.msk.f32.gmra.mxu3 %vm36_vm0, %v1176_v12 }
 0x124   :  { %v206_v26 = vpop.f32.mrf.mxu1 }
 0x125   :  { %v1200_v47 = vadd.f32 %v206_v26, %v132_v35 }
 0x127   :  { %v231_v50 = vsel %vm230_vm1, %v1200_v47, -inf }
 0x12c   :  { %v209_v28 = vpop.f32.mrf.mxu1 }
 0x12d   :  { %v210_v53 = vadd.f32 %v209_v28, %v132_v35 }
 0x12f   :  { %v234_v54 = vsel %vm230_vm1, %v210_v53, -inf }
 0x134   :  { %v212_v30 = vpop.f32.mrf.mxu1 }
 0x135   :  { %v213_v42 = vadd.f32 %v212_v30, %v132_v35 }
 0x137   :  { %v237_v46 = vsel %vm230_vm1, %v213_v42, -inf }
 0x13c   :  { %v215_v31 = vpop.f32.mrf.mxu1 }
 0x13d   :  { %v216_v51 = vadd.f32 %v215_v31, %v132_v35 }
 0x13f   :  { %v240_v52 = vsel %vm230_vm1, %v216_v51, -inf }
 0x144   :  { %v218_v33 = vpop.f32.mrf.mxu1 }
 0x145   :  { %v219_v39 = vadd.f32 %v218_v33, %v132_v35 }
 0x147   :  { %v243_v41 = vsel %vm230_vm1, %v219_v39, -inf }
 0x14c   :  { %v221_v36 = vpop.f32.mrf.mxu1 }
 0x14d   :  { %v222_v37 = vadd.f32 %v221_v36, %v132_v35 }
 0x14f   :  { %v246_v38 = vsel %vm230_vm1, %v222_v37, -inf }
 0x150   :  { %247 = vmax.xlane.f32.xlu2 %v246_v38 }
 0x154   :  { %v224_v40 = vpop.f32.mrf.mxu1 }
 0x155   :  { %v225_v48 = vadd.f32 %v224_v40, %v132_v35 }
 0x157   :  { %v249_v49 = vsel %vm230_vm1, %v225_v48, -inf }
 0x158   :  { %244 = vmax.xlane.f32.xlu2 %v243_v41 }
 0x15c   :  { %v227_v43 = vpop.f32.mrf.mxu1 }
 0x15d   :  { %v228_v44 = vadd.f32 %v227_v43, %v132_v35 }
 0x15f   :  { %v252_v45 = vsel %vm230_vm1, %v228_v44, -inf }
 0x160   :  { %253 = vmax.xlane.f32.xlu1 %v252_v45  ;;  %238 = vmax.xlane.f32.xlu2 %v237_v46 }
 0x168   :  { %250 = vmax.xlane.f32.xlu1 %v249_v49  ;;  %232 = vmax.xlane.f32.xlu2 %v231_v50 }
 0x170   :  { %241 = vmax.xlane.f32.xlu1 %v240_v52 }
 0x178   :  { %235 = vmax.xlane.f32.xlu1 %v234_v54 }
 0x1c3   :  { %v248_v55 = vpop.xlane.xlu2 %247 }
 0x1c4   :  { %v260_v56 = vsub.f32 %v222_v37, %v248_v55 }
 0x1c6   :  { %v273_v57 = vmul.f32 1.442695, %v260_v56 }
 0x1c8   :  { %1004 = vpow2.f32 %v273_v57 }
 0x1cb   :  { %v245_v63 = vpop.xlane.xlu2 %244 }
 0x1cc   :  { %v259_v13 = vsub.f32 %v219_v39, %v245_v63 }
 0x1ce   :  { %v1207_v58 = vpop.eup %1004  ;;  %v271_v20 = vmul.f32 1.442695, %v259_v13 }
 0x1cf   :  { %v294_v59 = vsel %vm230_vm1, %v1207_v58, 0.0 }
 0x1d0   :  { %295 = vadd.xlane.f32.xlu2 %v294_v59 }
 0x1d3   :  { %v254_v60 = vpop.xlane.xlu1 %253  ;;  %v239_v18 = vpop.xlane.xlu2 %238 }
 0x1d4   :  { %v262_v61 = vsub.f32 %v228_v44, %v254_v60  ;;  %v257_v28 = vsub.f32 %v213_v42, %v239_v18 }
 0x1d6   :  { %v277_v62 = vmul.f32 1.442695, %v262_v61  ;;  %v267_v33 = vmul.f32 1.442695, %v257_v28 }
 0x1d8   :  { %1006 = vpow2.f32 %v277_v62 }
 0x1db   :  { %v251_v1 = vpop.xlane.xlu1 %250  ;;  %v233_v34 = vpop.xlane.xlu2 %232 }
 0x1dc   :  { %v261_v2 = vsub.f32 %v225_v48, %v251_v1  ;;  %v255_v39 = vsub.f32 %v1200_v47, %v233_v34  ;;  %v31_v48 = vld [vmem:[%s1689_s2 + $0x18] sm:$0xff] }
 0x1de   :  { %v1211_v3 = vpop.eup %1006  ;;  %v275_v14 = vmul.f32 1.442695, %v261_v2  ;;  %v263_v4 = vmul.f32 1.442695, %v255_v39 }
 0x1df   :  { %v300_v15 = vsel %vm230_vm1, %v1211_v3, 0.0 }
 0x1e0   :  { %1008 = vpow2.f32 %v275_v14  ;;  %301 = vadd.xlane.f32.xlu0 %v300_v15 }
 0x1e1   :  { %1010 = vpow2.f32 %v271_v20 }
 0x1e3   :  { %v242_v22 = vpop.xlane.xlu1 %241 }
 0x1e4   :  { %v258_v23 = vsub.f32 %v216_v51, %v242_v22 }
 0x1e6   :  { %v1230_v26 = vpop.eup %1008  ;;  %v269_v30 = vmul.f32 1.442695, %v258_v23 }
 0x1e7   :  { %v297_v31 = vsel %vm230_vm1, %v1230_v26, 0.0  ;;  %v1236_v36 = vpop.eup %1010 }
 0x1e8   :  { %1012 = vpow2.f32 %v269_v30  ;;  %298 = vadd.xlane.f32.xlu1 %v297_v31  ;;  %v291_v41 = vsel %vm230_vm1, %v1236_v36, 0.0 }
 0x1e9   :  { %1014 = vpow2.f32 %v267_v33 }
 0x1eb   :  { %v236_v35 = vpop.xlane.xlu1 %235 }
 0x1ec   :  { %v256_v37 = vsub.f32 %v210_v53, %v236_v35 }
 0x1ee   :  { %v1238_v38 = vpop.eup %1012  ;;  %v265_v40 = vmul.f32 1.442695, %v256_v37  ;;  %v1319_v37 = vpop.f32.mrf.mxu3 }
 0x1ef   :  { %v288_v42 = vsel %vm230_vm1, %v1238_v38, 0.0  ;;  %v1247_v43 = vpop.eup %1014 }
 0x1f0   :  { %1016 = vpow2.f32 %v265_v40  ;;  %292 = vadd.xlane.f32.xlu1 %v291_v41  ;;  %289 = vadd.xlane.f32.xlu2 %v288_v42  ;;  %v285_v45 = vsel %vm230_vm1, %v1247_v43, 0.0 }
 0x1f1   :  { %1018 = vpow2.f32 %v263_v4 }
 0x1f6   :  { %v1249_v44 = vpop.eup %1016 }
 0x1f7   :  { %v282_v46 = vsel %vm230_vm1, %v1249_v44, 0.0  ;;  %v1257_v47 = vpop.eup %1018 }
 0x1f8   :  { %286 = vadd.xlane.f32.xlu1 %v285_v45  ;;  %283 = vadd.xlane.f32.xlu2 %v282_v46  ;;  %v279_v5 = vsel %vm230_vm1, %v1257_v47, 0.0 }
 0x200   :  { %280 = vadd.xlane.f32.xlu1 %v279_v5 }
 0x210   :  { %125 = vperm.xlu2 %1002, %v31_v48  }
 0x23a   :  { %555 = vxpose.xlu1.b32.start [1/4] (short) (narrow) %v955_v24, 64 }
 0x242   :  { %556 = vxpose.xlu1.b32.cont [2/4] (short) (narrow) %v956_v21, 64 }
 0x243   :  { %v1276_v6 = vpop.xlane.xlu2 %295 }
 0x244   :  { %1020 = vrcp.f32 %v1276_v6  ;;  %vm378_vm8 = vweird.f32 %v1276_v6  ;;  %v384_v15 = vand.u32 2147483648, %v1276_v6  ;;  %v382_v19 = vand.u32 2147483647, %v1276_v6 }
 0x246   :  { %v385_v33 = vor.u32 1.1754944e-38, %v384_v15  ;;  %vm383_vm13 = vcmp.eq.f32.partialorder %v382_v19, 8.507059e+37 }
 0x24a   :  { %557 = vxpose.xlu1.b32.cont [3/4] (short) (narrow) %v957_v17, 64  ;;  %v1280_v8 = vpop.eup %1020 }
 0x24b   :  { %v374_v10 = vmul.f32 %v1280_v8, %v1276_v6  ;;  %vm379_vm6 = vweird.f32 %v1280_v8 }
 0x24c   :  { %vm1298_vm10 = vmor %vm378_vm8, %vm379_vm6 }
 0x24d   :  { %v375_v50 = vsub.f32 1.0, %v374_v10 }
 0x24f   :  { %v376_v56 = vmul.f32 %v1280_v8, %v375_v50 }
 0x251   :  { %v377_v14 = vadd.f32 %v1280_v8, %v376_v56 }
 0x252   :  { %558 = vxpose.xlu1.b32.end [4/4] (short) (narrow) %v1218_v16, 64 }
 0x253   :  { %v302_v7 = vpop.xlane.xlu0 %301  ;;  %v381_v31 = vsel %vm1298_vm10, %v1280_v8, %v377_v14 }
 0x254   :  { %1022 = vrcp.f32 %v302_v7  ;;  %v412_v52 = vand.u32 2147483648, %v302_v7  ;;  %v410_v53 = vand.u32 2147483647, %v302_v7  ;;  %vm406_vm3 = vweird.f32 %v302_v7 }
 0x255   :  { %v386_v42 = vsel %vm383_vm13, %v385_v33, %v381_v31 }
 0x256   :  { %v413_v57 = vor.u32 1.1754944e-38, %v412_v52  ;;  %vm411_vm5 = vcmp.eq.f32.partialorder %v410_v53, 8.507059e+37 }
 0x25a   :  { %v1023_v9 = vpop.eup %1022 }
 0x25b   :  { %v402_v11 = vmul.f32 %v1023_v9, %v302_v7  ;;  %v299_v49 = vpop.xlane.xlu1 %298  ;;  %vm407_vm2 = vweird.f32 %v1023_v9 }
 0x25c   :  { %1024 = vrcp.f32 %v299_v49  ;;  %vm408_vm4 = vmor %vm406_vm3, %vm407_vm2  ;;  %v398_v16 = vand.u32 2147483648, %v299_v49  ;;  %vm392_vm9 = vweird.f32 %v299_v49  ;;  %v396_v18 = vand.u32 2147483647, %v299_v49 }
 0x25d   :  { %v403_v12 = vsub.f32 1.0, %v402_v11 }
 0x25e   :  { %v399_v34 = vor.u32 1.1754944e-38, %v398_v16  ;;  %vm397_vm12 = vcmp.eq.f32.partialorder %v396_v18, 8.507059e+37 }
 0x25f   :  { %v404_v51 = vmul.f32 %v1023_v9, %v403_v12 }
 0x261   :  { %v405_v54 = vadd.f32 %v1023_v9, %v404_v51 }
 0x262   :  { %v1025_v55 = vpop.eup %1024 }
 0x263   :  { %v388_v59 = vmul.f32 %v1025_v55, %v299_v49  ;;  %v1285_v60 = vpop.xlane.xlu1 %292  ;;  %v1287_v61 = vpop.xlane.xlu2 %289  ;;  %v409_v62 = vsel %vm408_vm4, %v1023_v9, %v405_v54  ;;  %vm393_vm7 = vweird.f32 %v1025_v55  ;;  %v420_v9 = vmul.f32 %v1207_v58, %v386_v42 }
 0x264   :  { %1026 = vrcp.f32 %v1285_v60  ;;  %v414_v1 = vsel %vm411_vm5, %v413_v57, %v409_v62  ;;  %vm1303_vm11 = vmor %vm392_vm9, %vm393_vm7  ;;  %v370_v45 = vand.u32 2147483648, %v1285_v60  ;;  %v368_v48 = vand.u32 2147483647, %v1285_v60  ;;  %v526_v57 = vpop.f32.mrf.mxu3 }
 0x265   :  { %v389_v63 = vsub.f32 1.0, %v388_v59  ;;  %1028 = vrcp.f32 %v1287_v61  ;;  %v422_v2 = vmul.f32 %v1211_v3, %v414_v1  ;;  %vm364_vm15 = vweird.f32 %v1285_v60 }
 0x266   :  { %vm350_vm3 = vweird.f32 %v1287_v61  ;;  %v356_v8 = vand.u32 2147483648, %v1287_v61  ;;  %v371_v49 = vor.u32 1.1754944e-38, %v370_v45  ;;  %v354_v52 = vand.u32 2147483647, %v1287_v61 }
 0x267   :  { %v390_v13 = vmul.f32 %v1025_v55, %v389_v63  ;;  %943 = vmatpush.xpose.msk.msrb.mxu0 %vm230_vm1, %v422_v2  ;;  %992 = vmatpush.xpose.msk.msra.mxu2 %vm230_vm1, %v422_v2  ;;  %vm369_vm5 = vcmp.eq.f32.partialorder %v368_v48, 8.507059e+37 }
 0x268   :  { %v357_v59 = vor.u32 1.1754944e-38, %v356_v8  ;;  %vm355_vm7 = vcmp.eq.f32.partialorder %v354_v52, 8.507059e+37 }
 0x269   :  { %v391_v17 = vadd.f32 %v1025_v55, %v390_v13 }
 0x26a   :  { %v1027_v20 = vpop.eup %1026 }
 0x26b   :  { %v1029_v22 = vpop.eup %1028  ;;  %v360_v23 = vmul.f32 %v1027_v20, %v1285_v60  ;;  %v1308_v24 = vpop.xlane.xlu1 %286  ;;  %v395_v30 = vsel %vm1303_vm11, %v1025_v55, %v391_v17  ;;  %vm365_vm14 = vweird.f32 %v1027_v20 }
 0x26c   :  { %v1310_v28 = vpop.xlane.xlu2 %283  ;;  %v346_v35 = vmul.f32 %v1029_v22, %v1287_v61  ;;  %1030 = vrcp.f32 %v1308_v24  ;;  %v400_v41 = vsel %vm397_vm12, %v399_v34, %v395_v30  ;;  %vm351_vm2 = vweird.f32 %v1029_v22  ;;  %vm1331_vm4 = vmor %vm364_vm15, %vm365_vm14  ;;  %v529_v34 = vpop.f32.mrf.mxu3 }
 0x26d   :  { %v361_v39 = vsub.f32 1.0, %v360_v23  ;;  %1032 = vrcp.f32 %v1310_v28  ;;  %v421_v46 = vmul.f32 %v1230_v26, %v400_v41  ;;  %vm1344_vm6 = vmor %vm350_vm3, %vm351_vm2  ;;  %v342_v60 = vand.u32 2147483648, %v1308_v24 }
 0x26e   :  { %v347_v40 = vsub.f32 1.0, %v346_v35  ;;  %v340_v1 = vand.u32 2147483647, %v1308_v24  ;;  %vm336_vm9 = vweird.f32 %v1308_v24  ;;  %vm322_vm10 = vweird.f32 %v1310_v28 }
 0x26f   :  { %v362_v4 = vmul.f32 %v1027_v20, %v361_v39  ;;  %944 = vmatpush.xpose.msk.msrb.mxu0 %vm230_vm1, %v421_v46  ;;  %993 = vmatpush.xpose.msk.msra.mxu2 %vm230_vm1, %v421_v46  ;;  %v343_v16 = vor.u32 1.1754944e-38, %v342_v60  ;;  %v326_v18 = vand.u32 2147483647, %v1310_v28 }
 0x270   :  { %v348_v5 = vmul.f32 %v1029_v22, %v347_v40  ;;  %vm341_vm13 = vcmp.eq.f32.partialorder %v340_v1, 8.507059e+37 }
 0x271   :  { %v363_v6 = vadd.f32 %v1027_v20, %v362_v4  ;;  %vm327_vm15 = vcmp.eq.f32.partialorder %v326_v18, 8.507059e+37 }
 0x272   :  { %v1031_v7 = vpop.eup %1030  ;;  %v349_v10 = vadd.f32 %v1029_v22, %v348_v5 }
 0x273   :  { %v1033_v11 = vpop.eup %1032  ;;  %v332_v12 = vmul.f32 %v1031_v7, %v1308_v24  ;;  %v1336_v50 = vpop.xlane.xlu1 %280  ;;  %v367_v51 = vsel %vm1331_vm4, %v1027_v20, %v363_v6  ;;  %945 = vmatpush.xpose.msk.msrb.mxu0 %vm230_vm1, %v420_v9  ;;  %994 = vmatpush.xpose.msk.msra.mxu2 %vm230_vm1, %v420_v9  ;;  %vm337_vm8 = vweird.f32 %v1031_v7 }
 0x274   :  { %v318_v53 = vmul.f32 %v1033_v11, %v1310_v28  ;;  %1034 = vrcp.f32 %v1336_v50  ;;  %v372_v55 = vsel %vm369_vm5, %v371_v49, %v367_v51  ;;  %v353_v56 = vsel %vm1344_vm6, %v1029_v22, %v349_v10  ;;  %vm338_vm12 = vmor %vm336_vm9, %vm337_vm8  ;;  %v1377_v4 = vpop.permute.xlu2 %125  ;;  %v532_v45 = vpop.f32.mrf.mxu3 }
 0x275   :  { %v333_v54 = vsub.f32 1.0, %v332_v12  ;;  %v419_v62 = vmul.f32 %v1236_v36, %v372_v55  ;;  %v358_v13 = vsel %vm355_vm7, %v357_v59, %v353_v56  ;;  %vm323_vm11 = vweird.f32 %v1033_v11 }
 0x276   :  { %v319_v61 = vsub.f32 1.0, %v318_v53  ;;  %v328_v36 = vand.u32 2147483648, %v1310_v28  ;;  %v418_v19 = vmul.f32 %v1238_v38, %v358_v13  ;;  %vm324_vm14 = vmor %vm322_vm10, %vm323_vm11  ;;  %v314_v31 = vand.u32 2147483648, %v1336_v50 }
 0x277   :  { %v334_v63 = vmul.f32 %v1031_v7, %v333_v54  ;;  %946 = vmatpush.xpose.msk.msrb.mxu0 %vm230_vm1, %v419_v62  ;;  %995 = vmatpush.xpose.msk.msra.mxu2 %vm230_vm1, %v419_v62  ;;  %v312_v38 = vand.u32 2147483647, %v1336_v50  ;;  %vm308_vm3 = vweird.f32 %v1336_v50  ;;  %v131_v46 = vadd.f32 %v1377_v4, %v1194_v32 }
 0x278   :  { %v320_v2 = vmul.f32 %v1033_v11, %v319_v61  ;;  %v329_v30 = vor.u32 1.1754944e-38, %v328_v36  ;;  %v315_v39 = vor.u32 1.1754944e-38, %v314_v31 }
 0x279   :  { %v335_v14 = vadd.f32 %v1031_v7, %v334_v63  ;;  %vm313_vm5 = vcmp.eq.f32.partialorder %v312_v38, 8.507059e+37 }
 0x27a   :  { %v1035_v15 = vpop.eup %1034  ;;  %v321_v17 = vadd.f32 %v1033_v11, %v320_v2 }
 0x27b   :  { %v304_v3 = vmul.f32 %v1035_v15, %v1336_v50  ;;  %v339_v20 = vsel %vm338_vm12, %v1031_v7, %v335_v14  ;;  %947 = vmatpush.xpose.msk.msrb.mxu0 %vm230_vm1, %v418_v19  ;;  %996 = vmatpush.xpose.msk.msra.mxu2 %vm230_vm1, %v418_v19  ;;  %vm309_vm2 = vweird.f32 %v1035_v15 }
 0x27c   :  { %v344_v21 = vsel %vm341_vm13, %v343_v16, %v339_v20  ;;  %v325_v24 = vsel %vm324_vm14, %v1033_v11, %v321_v17  ;;  %vm310_vm4 = vmor %vm308_vm3, %vm309_vm2  ;;  %v1404_v11 = vpop.f32.mrf.mxu3 }
 0x27d   :  { %v305_v22 = vsub.f32 1.0, %v304_v3  ;;  %v417_v23 = vmul.f32 %v1247_v43, %v344_v21  ;;  %v330_v35 = vsel %vm327_vm15, %v329_v30, %v325_v24 }
 0x27e   :  { %v416_v43 = vmul.f32 %v1249_v44, %v330_v35 }
 0x27f   :  { %v306_v33 = vmul.f32 %v1035_v15, %v305_v22  ;;  %948 = vmatpush.xpose.msk.msrb.mxu0 %vm230_vm1, %v417_v23  ;;  %997 = vmatpush.xpose.msk.msra.mxu2 %vm230_vm1, %v417_v23 }
 0x281   :  { %v307_v28 = vadd.f32 %v1035_v15, %v306_v33 }
 0x283   :  { %v311_v40 = vsel %vm310_vm4, %v1035_v15, %v307_v28  ;;  %949 = vmatpush.xpose.msk.msrb.mxu0 %vm230_vm1, %v416_v43  ;;  %998 = vmatpush.xpose.msk.msra.mxu2 %vm230_vm1, %v416_v43 }
 0x284   :  { %v316_v41 = vsel %vm313_vm5, %v315_v39, %v311_v40  ;;  %v1406_v49 = vpop.f32.mrf.mxu3 }
 0x285   :  { %v415_v42 = vmul.f32 %v1257_v47, %v316_v41 }
 0x287   :  { %950 = vmatpush.xpose.msk.msrb.mxu0 %vm230_vm1, %v415_v42  ;;  %999 = vmatpush.xpose.msk.msra.mxu2 %vm230_vm1, %v415_v42 }
 0x28a   :  { %954 = vmatmul.msk.f32.vlgmr.msra.gmra.mxu2 %vm230_vm1, %v131_v46 }
 0x28b   :  { %623 = vmatpush.msrb.mxu2 %v532_v45 }
 0x28c   :  { %v1408_v12 = vpop.f32.mrf.mxu3 }
 0x28d   :  { %624 = vmatpush.msrb.mxu2 %v529_v34 }
 0x28f   :  { %625 = vmatpush.msrb.mxu2 %v526_v57 }
 0x291   :  { %626 = vmatpush.msrb.mxu2 %v1319_v37  ;;  %v1394_v37 = vstv %s1690_s3 }
 0x294   :  { %v1410_v50 = vpop.f32.mrf.mxu3 }
 0x29c   :  { %v547_v51 = vpop.f32.mrf.mxu3 }
 0x29d   :  { %v554_v52 = vperm.slane %v547_v51, 0 }
 0x2de   :  { %v571_v44 = vpop.trf.xlu1 }
 0x2df   :  { %968 = vmatmul.msk.f32.vlgmr.msrb.gmra.mxu2 %vm36_vm0, %v571_v44 }
 0x2e6   :  { %v572_v47 = vpop.trf.xlu1 }
 0x2e7   :  { %969 = vmatmul.msk.f32.gmra.mxu2 %vm36_vm0, %v572_v47 }
 0x2ee   :  { %v573_v5 = vpop.trf.xlu1 }
 0x2ef   :  { %970 = vmatmul.msk.f32.gmra.mxu2 %vm36_vm0, %v573_v5 }
 0x2f6   :  { %v574_v48 = vpop.trf.xlu1 }
 0x2f7   :  { %971 = vmatmul.msk.f32.gmra.mxu2 %vm36_vm0, %v574_v48 }
 0x2fe   :  { %v575_v32 = vpop.trf.xlu1 }
 0x2ff   :  { %972 = vmatmul.msk.f32.gmra.mxu2 %vm36_vm0, %v575_v32 }
 0x306   :  { %v576_v6 = vpop.trf.xlu1 }
 0x307   :  { %973 = vmatmul.msk.f32.gmra.mxu2 %vm36_vm0, %v576_v6 }
 0x30d   :  { %v485_v8 = vpop.f32.mrf.mxu2 }
 0x30e   :  { %v577_v7 = vpop.trf.xlu1  ;;  %v492_v9 = vmul.f32 %v1394_v37, %v485_v8 }
 0x30f   :  { %974 = vmatmul.msk.f32.gmra.mxu2 %vm36_vm0, %v577_v7 }
 0x310   :  { %v496_v26 = vadd.f32 %v492_v9, %v1104_v0 }
 0x312   :  { %500 = vst.msk [vmem:[%s1691_s4 + $0x18] sm:$0xff] %vm230_vm1, %v496_v26 }
 0x316   :  { %v578_v10 = vpop.trf.xlu1 }
 0x317   :  { %975 = vmatmul.msk.f32.gmra.mxu2 %vm36_vm0, %v578_v10 }
 0x362   :  { %v628_v53 = vpop.f32.mrf.mxu2 }
 0x363   :  { %v1412_v0 = vadd.f32 %v628_v53, %v554_v52 }
 0x365   :  { %v652_v20 = vsel %vm230_vm1, %v1412_v0, -inf }
 0x36a   :  { %v631_v58 = vpop.f32.mrf.mxu2 }
 0x36b   :  { %v1414_v54 = vadd.f32 %v631_v58, %v554_v52 }
 0x36d   :  { %v655_v19 = vsel %vm230_vm1, %v1414_v54, -inf }
 0x372   :  { %v634_v55 = vpop.f32.mrf.mxu2 }
 0x373   :  { %v635_v56 = vadd.f32 %v634_v55, %v554_v52 }
 0x375   :  { %v658_v57 = vsel %vm230_vm1, %v635_v56, -inf }
 0x376   :  { %659 = vmax.xlane.f32.xlu1 %v658_v57 }
 0x37a   :  { %v637_v59 = vpop.f32.mrf.mxu2 }
 0x37b   :  { %v638_v18 = vadd.f32 %v637_v59, %v554_v52 }
 0x37d   :  { %v661_v3 = vsel %vm230_vm1, %v638_v18, -inf }
 0x382   :  { %v640_v60 = vpop.f32.mrf.mxu2 }
 0x383   :  { %v641_v36 = vadd.f32 %v640_v60, %v554_v52 }
 0x385   :  { %v664_v17 = vsel %vm230_vm1, %v641_v36, -inf }
 0x38a   :  { %v643_v61 = vpop.f32.mrf.mxu2 }
 0x38b   :  { %v644_v62 = vadd.f32 %v643_v61, %v554_v52  ;;  %v29_v61 = vld [vmem:[%s1689_s2 + $0x8] sm:$0xff] }
 0x38d   :  { %v667_v63 = vsel %vm230_vm1, %v644_v62, -inf }
 0x38e   :  { %668 = vmax.xlane.f32.xlu2 %v667_v63  ;;  %v30_v63 = vld [vmem:[%s1689_s2 + $0x10] sm:$0xff] }
 0x392   :  { %v646_v1 = vpop.f32.mrf.mxu2 }
 0x393   :  { %v647_v2 = vadd.f32 %v646_v1, %v554_v52 }
 0x395   :  { %v670_v13 = vsel %vm230_vm1, %v647_v2, -inf }
 0x396   :  { %671 = vmax.xlane.f32.xlu2 %v670_v13 }
 0x39a   :  { %v649_v14 = vpop.f32.mrf.mxu2 }
 0x39b   :  { %v650_v15 = vadd.f32 %v649_v14, %v554_v52 }
 0x39d   :  { %v673_v16 = vsel %vm230_vm1, %v650_v15, -inf }
 0x39e   :  { %674 = vmax.xlane.f32.xlu2 %v673_v16 }
 0x3a6   :  { %665 = vmax.xlane.f32.xlu2 %v664_v17 }
 0x3ae   :  { %662 = vmax.xlane.f32.xlu2 %v661_v3 }
 0x3b6   :  { %656 = vmax.xlane.f32.xlu2 %v655_v19 }
 0x3be   :  { %653 = vmax.xlane.f32.xlu2 %v652_v20 }
 0x3e9   :  { %v660_v38 = vpop.xlane.xlu1 %659 }
 0x3ea   :  { %v678_v39 = vsub.f32 %v635_v56, %v660_v38 }
 0x3ec   :  { %v688_v45 = vmul.f32 1.442695, %v678_v39 }
 0x401   :  { %v669_v21 = vpop.xlane.xlu2 %668 }
 0x402   :  { %v681_v40 = vsub.f32 %v644_v62, %v669_v21  ;;  %v28_v62 = vld [vmem:[%s1689_s2] sm:$0xff] }
 0x404   :  { %v694_v46 = vmul.f32 1.442695, %v681_v40 }
 0x409   :  { %v672_v22 = vpop.xlane.xlu2 %671 }
 0x40a   :  { %v682_v31 = vsub.f32 %v647_v2, %v672_v22 }
 0x40c   :  { %v696_v34 = vmul.f32 1.442695, %v682_v31 }
 0x411   :  { %v675_v23 = vpop.xlane.xlu2 %674 }
 0x412   :  { %v683_v48 = vsub.f32 %v650_v15, %v675_v23 }
 0x414   :  { %v698_v7 = vmul.f32 1.442695, %v683_v48 }
 0x419   :  { %v666_v24 = vpop.xlane.xlu2 %665 }
 0x41a   :  { %v680_v30 = vsub.f32 %v641_v36, %v666_v24 }
 0x41c   :  { %v692_v33 = vmul.f32 1.442695, %v680_v30 }
 0x41e   :  { %1036 = vpow2.f32 %v692_v33 }
 0x41f   :  { %1038 = vpow2.f32 %v696_v34 }
 0x421   :  { %v663_v35 = vpop.xlane.xlu2 %662 }
 0x422   :  { %v679_v28 = vsub.f32 %v638_v18, %v663_v35 }
 0x424   :  { %v1426_v43 = vpop.eup %1036  ;;  %v690_v41 = vmul.f32 1.442695, %v679_v28 }
 0x425   :  { %v712_v42 = vsel %vm230_vm1, %v1426_v43, 0.0  ;;  %v1430_v47 = vpop.eup %1038 }
 0x426   :  { %1040 = vpow2.f32 %v690_v41  ;;  %713 = vadd.xlane.f32.xlu0 %v712_v42  ;;  %v718_v32 = vsel %vm230_vm1, %v1430_v47, 0.0 }
 0x427   :  { %1042 = vpow2.f32 %v688_v45 }
 0x428   :  { %1044 = vpow2.f32 %v694_v46 }
 0x429   :  { %v657_v44 = vpop.xlane.xlu2 %656  ;;  %1046 = vpow2.f32 %v698_v7 }
 0x42a   :  { %v677_v51 = vsub.f32 %v1414_v54, %v657_v44 }
 0x42c   :  { %v1432_v5 = vpop.eup %1040  ;;  %v686_v55 = vmul.f32 1.442695, %v677_v51 }
 0x42d   :  { %v709_v6 = vsel %vm230_vm1, %v1432_v5, 0.0  ;;  %v1438_v8 = vpop.eup %1042 }
 0x42e   :  { %719 = vadd.xlane.f32.xlu0 %v718_v32  ;;  %710 = vadd.xlane.f32.xlu2 %v709_v6  ;;  %v1440_v26 = vpop.eup %1044  ;;  %v706_v53 = vsel %vm230_vm1, %v1438_v8, 0.0 }
 0x42f   :  { %v715_v58 = vsel %vm230_vm1, %v1440_v26, 0.0  ;;  %v1448_v56 = vpop.eup %1046 }
 0x431   :  { %v654_v9 = vpop.xlane.xlu2 %653 }
 0x432   :  { %v676_v10 = vsub.f32 %v1412_v0, %v654_v9  ;;  %v721_v0 = vsel %vm230_vm1, %v1448_v56, 0.0 }
 0x434   :  { %v684_v52 = vmul.f32 1.442695, %v676_v10 }
 0x436   :  { %1048 = vpow2.f32 %v684_v52  ;;  %707 = vadd.xlane.f32.xlu0 %v706_v53  ;;  %716 = vadd.xlane.f32.xlu2 %v715_v58 }
 0x437   :  { %1050 = vpow2.f32 %v686_v55 }
 0x43c   :  { %v1450_v57 = vpop.eup %1048 }
 0x43d   :  { %v700_v54 = vsel %vm230_vm1, %v1450_v57, 0.0  ;;  %v1456_v59 = vpop.eup %1050 }
 0x43e   :  { %722 = vadd.xlane.f32.xlu2 %v721_v0  ;;  %701 = vadd.xlane.f32.xlu0 %v700_v54  ;;  %v703_v60 = vsel %vm230_vm1, %v1456_v59, 0.0 }
 0x446   :  { %704 = vadd.xlane.f32.xlu2 %v703_v60 }
 0x452   :  { %115 = vperm.xlu0 %1003, %v29_v61  }
 0x45e   :  { %110 = vperm.xlu2 %1002, %v28_v62  }
 0x466   :  { %120 = vperm.xlu2 %1002, %v30_v63  }
 0x499   :  { %v1469_v1 = vpop.xlane.xlu0 %713 }
 0x49a   :  { %vm785_vm3 = vweird.f32 %v1469_v1 }
 0x4a1   :  { %v1471_v2 = vpop.xlane.xlu2 %710  ;;  %v720_v13 = vpop.xlane.xlu0 %719 }
 0x4a2   :  { %1052 = vrcp.f32 %v720_v13  ;;  %vm813_vm7 = vweird.f32 %v720_v13  ;;  %v819_v48 = vand.u32 2147483648, %v720_v13  ;;  %v817_v32 = vand.u32 2147483647, %v720_v13 }
 0x4a4   :  { %v820_v60 = vor.u32 1.1754944e-38, %v819_v48  ;;  %vm818_vm14 = vcmp.eq.f32.partialorder %v817_v32, 8.507059e+37  ;;  %v1074_v48 = vld [vmem:[%s1687_s0 + $0x38] sm:$0xff] }
 0x4a8   :  { %v1476_v15 = vpop.eup %1052 }
 0x4a9   :  { %v1473_v14 = vpop.xlane.xlu2 %716  ;;  %v809_v16 = vmul.f32 %v1476_v15, %v720_v13  ;;  %v1485_v3 = vpop.xlane.xlu0 %707  ;;  %vm814_vm0 = vweird.f32 %v1476_v15 }
 0x4aa   :  { %1054 = vrcp.f32 %v1473_v14  ;;  %vm1510_vm9 = vmor %vm813_vm7, %vm814_vm0  ;;  %v805_v61 = vand.u32 2147483648, %v1473_v14  ;;  %vm799_vm13 = vweird.f32 %v1473_v14  ;;  %v803_v13 = vand.u32 2147483647, %v1473_v14 }
 0x4ab   :  { %1056 = vrcp.f32 %v1469_v1  ;;  %v810_v19 = vsub.f32 1.0, %v809_v16 }
 0x4ac   :  { %1058 = vrcp.f32 %v1471_v2  ;;  %vm804_vm4 = vcmp.eq.f32.partialorder %v803_v13, 8.507059e+37 }
 0x4ad   :  { %v811_v24 = vmul.f32 %v1476_v15, %v810_v19 }
 0x4af   :  { %v812_v40 = vadd.f32 %v1476_v15, %v811_v24 }
 0x4b0   :  { %v1481_v17 = vpop.eup %1054 }
 0x4b1   :  { %v723_v36 = vpop.xlane.xlu2 %722  ;;  %v1483_v18 = vpop.eup %1056  ;;  %v795_v20 = vmul.f32 %v1481_v17, %v1473_v14  ;;  %v816_v53 = vsel %vm1510_vm9, %v1476_v15, %v812_v40  ;;  %vm800_vm11 = vweird.f32 %v1481_v17 }
 0x4b2   :  { %1060 = vrcp.f32 %v723_v36  ;;  %v781_v21 = vmul.f32 %v1483_v18, %v1469_v1  ;;  %v1492_v22 = vpop.eup %1058  ;;  %v833_v39 = vand.u32 2147483648, %v723_v36  ;;  %v1505_v42 = vpop.xlane.xlu0 %701  ;;  %v831_v46 = vand.u32 2147483647, %v723_v36  ;;  %vm1533_vm15 = vmor %vm799_vm13, %vm800_vm11 }
 0x4b3   :  { %1062 = vrcp.f32 %v1485_v3  ;;  %v796_v31 = vsub.f32 1.0, %v795_v20  ;;  %v767_v34 = vmul.f32 %v1492_v22, %v1471_v2  ;;  %vm827_vm8 = vweird.f32 %v723_v36 }
 0x4b4   :  { %v782_v38 = vsub.f32 1.0, %v781_v21  ;;  %v834_v51 = vor.u32 1.1754944e-38, %v833_v39  ;;  %vm832_vm12 = vcmp.eq.f32.partialorder %v831_v46, 8.507059e+37  ;;  %v821_v15 = vsel %vm818_vm14, %v820_v60, %v816_v53 }
 0x4b5   :  { %v797_v41 = vmul.f32 %v1481_v17, %v796_v31  ;;  %v768_v6 = vsub.f32 1.0, %v767_v34  ;;  %vm786_vm2 = vweird.f32 %v1483_v18  ;;  %v791_v21 = vand.u32 2147483648, %v1469_v1 }
 0x4b6   :  { %v783_v44 = vmul.f32 %v1483_v18, %v782_v38  ;;  %v842_v31 = vmul.f32 %v1430_v47, %v821_v15  ;;  %vm1553_vm5 = vmor %vm785_vm3, %vm786_vm2  ;;  %v789_v38 = vand.u32 2147483647, %v1469_v1  ;;  %vm772_vm0 = vweird.f32 %v1492_v22 }
 0x4b7   :  { %v798_v0 = vadd.f32 %v1481_v17, %v797_v41  ;;  %v769_v19 = vmul.f32 %v1492_v22, %v768_v6  ;;  %v792_v41 = vor.u32 1.1754944e-38, %v791_v21  ;;  %v775_v46 = vand.u32 2147483647, %v1471_v2 }
 0x4b8   :  { %v1061_v23 = vpop.eup %1060  ;;  %vm790_vm7 = vcmp.eq.f32.partialorder %v789_v38, 8.507059e+37  ;;  %v761_v53 = vand.u32 2147483647, %v1485_v3  ;;  %v735_v13 = vand.u32 2147483648, %v1505_v42 }
 0x4b9   :  { %v1495_v30 = vpop.xlane.xlu2 %704  ;;  %v823_v33 = vmul.f32 %v1061_v23, %v723_v36  ;;  %v1499_v28 = vpop.eup %1062  ;;  %vm828_vm6 = vweird.f32 %v1061_v23  ;;  %v784_v36 = vadd.f32 %v1483_v18, %v783_v44  ;;  %v802_v14 = vsel %vm1533_vm15, %v1481_v17, %v798_v0 }
 0x4ba   :  { %1064 = vrcp.f32 %v1495_v30  ;;  %v753_v7 = vmul.f32 %v1499_v28, %v1485_v3  ;;  %vm829_vm10 = vmor %vm827_vm8, %vm828_vm6  ;;  %v770_v1 = vadd.f32 %v1492_v22, %v769_v19  ;;  %vm771_vm6 = vweird.f32 %v1471_v2 }
 0x4bb   :  { %v824_v35 = vsub.f32 1.0, %v823_v33  ;;  %1066 = vrcp.f32 %v1505_v42  ;;  %vm1574_vm8 = vmor %vm771_vm6, %vm772_vm0  ;;  %vm758_vm9 = vweird.f32 %v1499_v28  ;;  %vm776_vm11 = vcmp.eq.f32.partialorder %v775_v46, 8.507059e+37 }
 0x4bc   :  { %vm743_vm14 = vweird.f32 %v1495_v30  ;;  %vm762_vm15 = vcmp.eq.f32.partialorder %v761_v53, 8.507059e+37  ;;  %v736_v16 = vor.u32 1.1754944e-38, %v735_v13 }
 0x4bd   :  { %v825_v45 = vmul.f32 %v1061_v23, %v824_v35  ;;  %v788_v35 = vsel %vm1553_vm5, %v1483_v18, %v784_v36 }
 0x4be   :  { %v793_v44 = vsel %vm790_vm7, %v792_v41, %v788_v35 }
 0x4bf   :  { %v826_v9 = vadd.f32 %v1061_v23, %v825_v45  ;;  %v777_v45 = vand.u32 2147483648, %v1471_v2  ;;  %v763_v2 = vand.u32 2147483648, %v1485_v3  ;;  %v840_v10 = vmul.f32 %v1426_v43, %v793_v44 }
 0x4c0   :  { %v1524_v54 = vpop.eup %1064 }
 0x4c1   :  { %v1515_v52 = vpop.permute.xlu2 %110  ;;  %v830_v55 = vsel %vm829_vm10, %v1061_v23, %v826_v9  ;;  %v1546_v20 = vpop.eup %1066  ;;  %v806_v23 = vor.u32 1.1754944e-38, %v805_v61  ;;  %vm757_vm10 = vweird.f32 %v1485_v3  ;;  %vm744_vm13 = vweird.f32 %v1524_v54 }
 0x4c2   :  { %v128_v58 = vadd.f32 %v1515_v52, %v1188_v25  ;;  %v835_v62 = vsel %vm832_vm12, %v834_v51, %v830_v55  ;;  %v754_v25 = vsub.f32 1.0, %v753_v7  ;;  %v725_v39 = vmul.f32 %v1546_v20, %v1505_v42  ;;  %vm1588_vm12 = vmor %vm757_vm10, %vm758_vm9 }
 0x4c3   :  { %v843_v63 = vmul.f32 %v1448_v56, %v835_v62  ;;  %v739_v56 = vmul.f32 %v1524_v54, %v1495_v30  ;;  %v807_v34 = vsel %vm804_vm4, %v806_v23, %v802_v14  ;;  %v778_v7 = vor.u32 1.1754944e-38, %v777_v45  ;;  %vm745_vm2 = vmor %vm743_vm14, %vm744_vm13  ;;  %v1073_v45 = vld [vmem:[%s1687_s0 + $0x30] sm:$0xff] }
 0x4c4   :  { %951 = vmatmul.msk.f32.vlgmr.msrb.gmra.mxu0 %vm230_vm1, %v128_v58  ;;  %v1550_v24 = vpop.permute.xlu0 %115  ;;  %v755_v17 = vmul.f32 %v1499_v28, %v754_v25  ;;  %v841_v18 = vmul.f32 %v1440_v26, %v807_v34  ;;  %v726_v32 = vsub.f32 1.0, %v725_v39  ;;  %v774_v26 = vsel %vm1574_vm8, %v1492_v22, %v770_v1 }
 0x4c5   :  { %976 = vmatpush.xpose.msk.msrb.mxu1 %vm230_vm1, %v843_v63  ;;  %v740_v47 = vsub.f32 1.0, %v739_v56  ;;  %v129_v40 = vadd.f32 %v1550_v24, %v1190_v27  ;;  %v779_v58 = vsel %vm776_vm11, %v778_v7, %v774_v26  ;;  %v764_v60 = vor.u32 1.1754944e-38, %v763_v2 }
 0x4c6   :  { %v756_v27 = vadd.f32 %v1499_v28, %v755_v17  ;;  %v727_v55 = vmul.f32 %v1546_v20, %v726_v32  ;;  %v749_v61 = vand.u32 2147483648, %v1495_v30  ;;  %v839_v3 = vmul.f32 %v1432_v5, %v779_v58  ;;  %v1071_v17 = vld [vmem:[%s1687_s0 + $0x20] sm:$0xff] }
 0x4c7   :  { %v741_v6 = vmul.f32 %v1524_v54, %v740_v47  ;;  %vm730_vm3 = vweird.f32 %v1546_v20  ;;  %vm729_vm4 = vweird.f32 %v1505_v42  ;;  %v553_v14 = vadd.f32 %v1410_v50, %v1377_v4  ;;  %v1069_v4 = vld [vmem:[%s1687_s0 + $0x8] sm:$0xff] }
 0x4c8   :  { %v760_v22 = vsel %vm1588_vm12, %v1499_v28, %v756_v27  ;;  %v747_v28 = vand.u32 2147483647, %v1495_v30  ;;  %v728_v63 = vadd.f32 %v1546_v20, %v727_v55  ;;  %v750_v25 = vor.u32 1.1754944e-38, %v749_v61  ;;  %vm731_vm0 = vmor %vm729_vm4, %vm730_vm3  ;;  %v1072_v47 = vld [vmem:[%s1687_s0 + $0x28] sm:$0xff] }
 0x4c9   :  { %977 = vmatpush.xpose.msk.msrb.mxu1 %vm230_vm1, %v842_v31  ;;  %v121_v9 = vpop.permute.xlu2 %120  ;;  %v742_v43 = vadd.f32 %v1524_v54, %v741_v6  ;;  %v765_v62 = vsel %vm762_vm15, %v764_v60, %v760_v22  ;;  %v733_v30 = vand.u32 2147483647, %v1505_v42  ;;  %v551_v42 = vadd.f32 %v1406_v49, %v1550_v24  ;;  %v1070_v24 = vld [vmem:[%s1687_s0 + $0x10] sm:$0xff] }
 0x4ca   :  { %v130_v0 = vadd.f32 %v121_v9, %v1192_v29  ;;  %v838_v5 = vmul.f32 %v1438_v8, %v765_v62  ;;  %vm748_vm5 = vcmp.eq.f32.partialorder %v747_v28, 8.507059e+37  ;;  %v550_v8 = vadd.f32 %v1404_v11, %v1515_v52  ;;  %v1068_v11 = vld [vmem:[%s1687_s0] sm:$0xff] }
 0x4cb   :  { %v746_v29 = vsel %vm745_vm2, %v1524_v54, %v742_v43  ;;  %v732_v54 = vsel %vm731_vm0, %v1546_v20, %v728_v63  ;;  %vm734_vm6 = vcmp.eq.f32.partialorder %v733_v30, 8.507059e+37 }
 0x4cc   :  { %952 = vmatmul.msk.f32.gmra.mxu0 %vm230_vm1, %v129_v40  ;;  %v751_v15 = vsel %vm748_vm5, %v750_v25, %v746_v29  ;;  %v737_v19 = vsel %vm734_vm6, %v736_v16, %v732_v54 }
 0x4cd   :  { %978 = vmatpush.xpose.msk.msrb.mxu1 %vm230_vm1, %v841_v18  ;;  %v837_v36 = vmul.f32 %v1456_v59, %v751_v15  ;;  %v836_v56 = vmul.f32 %v1450_v57, %v737_v19  ;;  %v552_v59 = vadd.f32 %v1408_v12, %v121_v9 }
 0x4d1   :  { %979 = vmatpush.xpose.msk.msrb.mxu1 %vm230_vm1, %v840_v10 }
 0x4d4   :  { %953 = vmatmul.msk.f32.gmra.mxu0 %vm230_vm1, %v130_v0 }
 0x4d5   :  { %980 = vmatpush.xpose.msk.msrb.mxu1 %vm230_vm1, %v839_v3 }
 0x4d9   :  { %981 = vmatpush.xpose.msk.msrb.mxu1 %vm230_vm1, %v838_v5 }
 0x4dd   :  { %982 = vmatpush.xpose.msk.msrb.mxu1 %vm230_vm1, %v837_v36 }
 0x4e1   :  { %983 = vmatpush.xpose.msk.msrb.mxu1 %vm230_vm1, %v836_v56 }
 0x4e4   :  { %984 = vmatmul.msk.f32.vlgmr.msrb.gmra.mxu1 %vm230_vm1, %v550_v8 }
 0x4ec   :  { %985 = vmatmul.msk.f32.gmra.mxu1 %vm230_vm1, %v551_v42 }
 0x4f4   :  { %986 = vmatmul.msk.f32.gmra.mxu1 %vm230_vm1, %v552_v59 }
 0x4fc   :  { %987 = vmatmul.msk.f32.gmra.mxu1 %vm230_vm1, %v553_v14 }
 0x541   :  { %v476_v57 = vpop.f32.mrf.mxu0 }
 0x542   :  { %v489_v20 = vmul.f32 %v1394_v37, %v476_v57 }
 0x544   :  { %v493_v52 = vadd.f32 %v1068_v11, %v489_v20 }
 0x546   :  { %497 = vst.msk [vmem:[%s1691_s4] sm:$0xff] %vm230_vm1, %v493_v52 }
 0x549   :  { %v479_v49 = vpop.f32.mrf.mxu0 }
 0x54a   :  { %v490_v12 = vmul.f32 %v1394_v37, %v479_v49 }
 0x54c   :  { %v494_v50 = vadd.f32 %v1069_v4, %v490_v12 }
 0x54e   :  { %498 = vst.msk [vmem:[%s1691_s4 + $0x8] sm:$0xff] %vm230_vm1, %v494_v50 }
 0x551   :  { %v482_v21 = vpop.f32.mrf.mxu0 }
 0x552   :  { %v491_v23 = vmul.f32 %v1394_v37, %v482_v21 }
 0x554   :  { %v495_v31 = vadd.f32 %v1070_v24, %v491_v23 }
 0x556   :  { %499 = vst.msk [vmem:[%s1691_s4 + $0x10] sm:$0xff] %vm230_vm1, %v495_v31 }
 0x561   :  { %v897_v33 = vpop.f32.mrf.mxu1 }
 0x562   :  { %v909_v38 = vmul.f32 %v897_v33, %v1394_v37 }
 0x564   :  { %v913_v34 = vadd.f32 %v1071_v17, %v909_v38 }
 0x566   :  { %988 = vst.msk [vmem:[%s1691_s4 + $0x20] sm:$0xff] %vm230_vm1, %v913_v34 }
 0x569   :  { %v900_v35 = vpop.f32.mrf.mxu1 }
 0x56a   :  { %v910_v39 = vmul.f32 %v900_v35, %v1394_v37 }
 0x56c   :  { %v914_v40 = vadd.f32 %v1072_v47, %v910_v39 }
 0x56e   :  { %989 = vst.msk [vmem:[%s1691_s4 + $0x28] sm:$0xff] %vm230_vm1, %v914_v40 }
 0x571   :  { %v903_v1 = vpop.f32.mrf.mxu1 }
 0x572   :  { %v911_v41 = vmul.f32 %v903_v1, %v1394_v37 }
 0x574   :  { %v915_v18 = vadd.f32 %v1073_v45, %v911_v41 }
 0x576   :  { %990 = vst.msk [vmem:[%s1691_s4 + $0x30] sm:$0xff] %vm230_vm1, %v915_v18 }
 0x579   :  { %v906_v46 = vpop.f32.mrf.mxu1 }
 0x57a   :  { %v912_v44 = vmul.f32 %v906_v46, %v1394_v37 }
 0x57c   :  { %v916_v27 = vadd.f32 %v1074_v48, %v912_v44 }
 0x57e   :  { %991 = vst.msk [vmem:[%s1691_s4 + $0x38] sm:$0xff] %vm230_vm1, %v916_v27 }

</bundles_post_ra>
